<compile_context>
chip_gen: v5e
topology: v5e:2x2
jax: 0.10.0
libtpu: 0.0.40
codegen_flags: <defaults>
</compile_context>

<pallas_src>
import functools

import jax
import jax.numpy as jnp
from jax import lax
from jax.experimental import pallas as pl
from jax.experimental.pallas import tpu as pltpu


def _round_up(x, m):
    return -(-x // m) * m


def _pick_batches_per_block(b, c1):
    """Smallest divisor d of b such that d*c1 fills whole 8-row sublane groups; else b."""
    for d in range(1, b + 1):
        if b % d == 0 and (d * c1) % 8 == 0:
            return d
    return b


def _reduce_kernel(n_true, n_tile,
                   params_ref, wps_ref, erep_ref, wt_ref, bt_ref,
                   x1_ref, x2_ref, s_ref, acc_u, acc_p):
    """Accumulate per-(batch,channel) statistics over N tiles and finalize the scale s.

    params_ref: SMEM (1,)       [b_phi_sum]
    wps_ref  : (1, C2, 1)       channel-summed phi weights
    erep_ref : (R1, BPB)        0/1 expander: batch row -> its C1 packed rows
    wt_ref   : (R1, R1)         block-diagonal (w_theta / IC)
    bt_ref   : (R1, 1)          tiled (b_theta / IC)
    x1_ref   : (R1, Nt)         packed rows, R1 = BPB * C1
    x2_ref   : (BPB, C2, Nt)
    s_ref    : (R1, 1)          output per-row scale (written on last N tile)
    """
    nt = pl.program_id(1)

    @pl.when(nt == 0)
    def _init():
        acc_u[...] = jnp.zeros_like(acc_u)
        acc_p[...] = jnp.zeros_like(acc_p)

    x1 = x1_ref[...].astype(jnp.float32)                 # (R1, Nt)
    x2 = x2_ref[...].astype(jnp.float32)                 # (BPB, C2, Nt)
    b_phi_sum = params_ref[0]

    # channel-summed phi (bias added after the batch-row expansion): (BPB, Nt)
    t = jnp.sum(x2 * wps_ref[...], axis=1)
    # expand each batch row to its C1 packed rows and add the summed phi bias
    t_rep = jnp.dot(erep_ref[...], t, preferred_element_type=jnp.float32) + b_phi_sum

    # mask lanes that are zero-padding of the spatial axis (keeps the bias exact)
    lane = lax.broadcasted_iota(jnp.int32, (1, n_tile), 1) + nt * n_tile
    t_rep = jnp.where(lane < n_true, t_rep, 0.0)

    acc_u[...] += jnp.sum(x1 * t_rep, axis=-1, keepdims=True)   # u (incl. bias term)
    acc_p[...] += jnp.sum(t_rep, axis=-1, keepdims=True)        # p (incl. N * b_phi_sum)

    @pl.when(nt == pl.num_programs(1) - 1)
    def _finalize():
        s = jnp.dot(wt_ref[...], acc_u[...], preferred_element_type=jnp.float32)
        s = s + bt_ref[...] * acc_p[...]
        s_ref[...] = s.astype(s_ref.dtype)


def _scale_kernel(x1_ref, s_ref, o_ref):
    # elementwise path kept in f32 (v5e has no bf16 VALU)
    o_ref[...] = (x1_ref[...].astype(jnp.float32) * s_ref[...]).astype(o_ref.dtype)


def nonlocal_block_forward(x1, x2, w_theta, b_theta, w_phi, b_phi,
                           *, compute_dtype=None, n_tile=None,
                           vmem_block_budget=24 * 1024 * 1024):
    """x1: (B, C1, H, W), x2: (B, C2, H, W) -- NCHW like the PyTorch module."""
    B, C1, H, W = x1.shape
    B2, C2, H2, W2 = x2.shape
    assert B == B2
    assert (H, W) == (H2, W2), "matmul requires equal spatial extents"
    IC = w_theta.shape[0]
    assert IC == C1, "forward's reshape requires inter_channels == in_channels_x1"
    out_dtype = x1.dtype
    f32 = jnp.float32

    N = H * W
    BPB = _pick_batches_per_block(B, C1)     # batches packed per grid step
    R1 = BPB * C1
    nBB = B // BPB

    in_dtype = jnp.dtype(compute_dtype) if compute_dtype is not None else jnp.dtype(x1.dtype)
    n_ceil = _round_up(N, 128)               # lane-dense spatial extent
    if n_tile is None:
        # double-buffered bytes per lane of the heavier pass, sized for the VMEM budget
        per_lane = 2 * max(R1 + BPB * C2, 2 * R1) * max(in_dtype.itemsize, 4)
        n_tile = max(128, (vmem_block_budget // per_lane) // 128 * 128)
    else:
        n_tile = max(128, _round_up(int(n_tile), 128))
    n_tile = min(n_tile, n_ceil)
    Npad = _round_up(N, n_tile)
    nNT = Npad // n_tile

    # ---- host-side prep (tiny) -----------------------------------------------------
    x1p = x1.reshape(B * C1, N)
    x2p = x2.reshape(B, C2, N)
    if Npad != N:
        x1p = jnp.pad(x1p, ((0, 0), (0, Npad - N)))
        x2p = jnp.pad(x2p, ((0, 0), (0, 0), (0, Npad - N)))
    if compute_dtype is not None:
        x1p = x1p.astype(compute_dtype)
        x2p = x2p.astype(compute_dtype)

    w_phi_sum = jnp.sum(w_phi.astype(f32), axis=0)               # (C2,)
    b_phi_sum = jnp.sum(b_phi.astype(f32)).reshape(1)            # (1,)  -> SMEM
    wt_s = w_theta.astype(f32) / IC                              # (C1, C1)
    bt_s = b_theta.astype(f32) / IC                              # (C1,)

    wps3 = w_phi_sum.reshape(1, C2, 1)
    erep = jnp.kron(jnp.eye(BPB, dtype=f32), jnp.ones((C1, 1), dtype=f32))   # (R1, BPB)
    wt_blk = jnp.kron(jnp.eye(BPB, dtype=f32), wt_s)                         # (R1, R1)
    bt_rep = jnp.tile(bt_s, BPB).reshape(R1, 1)                              # (R1, 1)

    vmem_limit = 40 * 1024 * 1024

    # ---- pass 1: per-(batch,channel) scale s ----------------------------------------
    s = pl.pallas_call(
        functools.partial(_reduce_kernel, N, n_tile),
        out_shape=jax.ShapeDtypeStruct((B * C1, 1), f32),
        grid=(nBB, nNT),
        in_specs=[
            pl.BlockSpec(memory_space=pltpu.MemorySpace.SMEM),                 # b_phi_sum
            pl.BlockSpec((1, C2, 1), lambda bb, nt: (0, 0, 0)),                # wps3
            pl.BlockSpec((R1, BPB), lambda bb, nt: (0, 0)),                    # erep
            pl.BlockSpec((R1, R1), lambda bb, nt: (0, 0)),                     # wt_blk
            pl.BlockSpec((R1, 1), lambda bb, nt: (0, 0)),                      # bt_rep
            pl.BlockSpec((R1, n_tile), lambda bb, nt: (bb, nt)),               # x1 packed
            pl.BlockSpec((BPB, C2, n_tile), lambda bb, nt: (bb, 0, nt)),       # x2
        ],
        out_specs=pl.BlockSpec((R1, 1), lambda bb, nt: (bb, 0)),
        scratch_shapes=[pltpu.VMEM((R1, 1), f32), pltpu.VMEM((R1, 1), f32)],
        compiler_params=pltpu.CompilerParams(
            dimension_semantics=("parallel", "arbitrary"),
            vmem_limit_bytes=vmem_limit),
    )(b_phi_sum, wps3, erep, wt_blk, bt_rep, x1p, x2p)

    # ---- pass 2: out = x1 * s (lane-dense tiles, fully parallel) ---------------------
    outp = pl.pallas_call(
        _scale_kernel,
        out_shape=jax.ShapeDtypeStruct((B * C1, Npad), out_dtype),
        grid=(nBB, nNT),
        in_specs=[
            pl.BlockSpec((R1, n_tile), lambda bb, nt: (bb, nt)),
            pl.BlockSpec((R1, 1), lambda bb, nt: (bb, 0)),
        ],
        out_specs=pl.BlockSpec((R1, n_tile), lambda bb, nt: (bb, nt)),
        compiler_params=pltpu.CompilerParams(
            dimension_semantics=("parallel", "parallel"),
            vmem_limit_bytes=vmem_limit),
    )(x1p, s)

    if Npad != N:
        outp = outp[:, :N]
    return outp.reshape(B, C1, H, W)


def _reference(x1, x2, w_theta, b_theta, w_phi, b_phi):
    """Plain-JAX replica of the PyTorch forward, for validation."""
    B, C1, H, W = x1.shape
    N = H * W
    theta = jnp.einsum("ic,bcn->bin", w_theta, x1.reshape(B, C1, N)) + b_theta[None, :, None]
    phi = jnp.einsum("ic,bcn->bin", w_phi, x2.reshape(B, x2.shape[1], N)) + b_phi[None, :, None]
    f = jnp.einsum("bin,bjn->bij", theta, phi)          # (B, IC, IC)
    f = jnp.mean(f, axis=-1)                            # (B, IC) == (B, C1)
    return x1 * f[:, :, None, None]


if __name__ == "__main__":
    key = jax.random.PRNGKey(0)
    k1, k2, k3, k4, k5, k6 = jax.random.split(key, 6)

    # module config: in_channels_x1=4, in_channels_x2=6, inter_channels=4, dimension=2
    B, C1, C2, H, W = 2, 4, 6, 16, 16
    IC = C1

    x1 = jax.random.normal(k1, (B, C1, H, W), dtype=jnp.float32)
    x2 = jax.random.normal(k2, (B, C2, H, W), dtype=jnp.float32)

    w_theta = jax.random.normal(k3, (IC, C1), dtype=jnp.float32) * 0.1
    b_theta = jax.random.normal(k4, (IC,), dtype=jnp.float32) * 0.1
    w_phi = jax.random.normal(k5, (IC, C2), dtype=jnp.float32) * 0.1
    b_phi = jax.random.normal(k6, (IC,), dtype=jnp.float32) * 0.1

    ref = _reference(x1, x2, w_theta, b_theta, w_phi, b_phi)

    # default path: single lane-dense 256-wide tile, 2 batches packed per grid step
    out = jax.block_until_ready(
        nonlocal_block_forward(x1, x2, w_theta, b_theta, w_phi, b_phi))
    assert out.shape == x1.shape
    assert jnp.allclose(out, ref, atol=1e-4, rtol=1e-4), "mismatch vs JAX reference"

    # multi-tile reduction path (N split into two 128-lane tiles, scratch accumulation)
    out_t = jax.block_until_ready(
        nonlocal_block_forward(x1, x2, w_theta, b_theta, w_phi, b_phi, n_tile=128))
    assert jnp.allclose(out_t, ref, atol=1e-4, rtol=1e-4), "mismatch (tiled N path)"

    # non-128-multiple spatial extent exercises the zero-pad + lane-mask path
    x1c, x2c = x1[:, :, :15, :15], x2[:, :, :15, :15]
    refc = _reference(x1c, x2c, w_theta, b_theta, w_phi, b_phi)
    outc = jax.block_until_ready(
        nonlocal_block_forward(x1c, x2c, w_theta, b_theta, w_phi, b_phi))
    assert jnp.allclose(outc, refc, atol=1e-4, rtol=1e-4), "mismatch (padded N path)"

    print("KERNEL_OK")
</pallas_src>

<mosaic_0001>
module attributes {stable_mosaic.version = 11 : i64} {
  func.func @_reduce_kernel(%arg0: i32, %arg1: i32, %arg2: memref<1xf32, #tpu.memory_space<smem>>, %arg3: memref<1x6x1xf32, #tpu.memory_space<vmem>>, %arg4: memref<8x2xf32, #tpu.memory_space<vmem>>, %arg5: memref<8x8xf32, #tpu.memory_space<vmem>>, %arg6: memref<8x1xf32, #tpu.memory_space<vmem>>, %arg7: memref<8x256xf32, #tpu.memory_space<vmem>>, %arg8: memref<2x6x256xf32, #tpu.memory_space<vmem>>, %arg9: memref<8x1xf32, #tpu.memory_space<vmem>>, %arg10: memref<8x1xf32, #tpu.memory_space<vmem>>, %arg11: memref<8x1xf32, #tpu.memory_space<vmem>>) attributes {dimension_semantics = [#tpu.dimension_semantics<parallel>, #tpu.dimension_semantics<arbitrary>], iteration_bounds = array<i64: 1, 1>, scalar_prefetch = 0 : i64, scratch_operands = 2 : i64, tpu.core_type = #tpu.core_type<tc>, window_params = [{transform_indices = @transform_0, window_bounds = array<i64: 1>}, {pipeline_mode = #tpu.pipeline_mode<synchronous>, transform_indices = @transform_1, window_bounds = array<i64: 1, 6, 1>}, {pipeline_mode = #tpu.pipeline_mode<synchronous>, transform_indices = @transform_2, window_bounds = array<i64: 8, 2>}, {pipeline_mode = #tpu.pipeline_mode<synchronous>, transform_indices = @transform_3, window_bounds = array<i64: 8, 8>}, {pipeline_mode = #tpu.pipeline_mode<synchronous>, transform_indices = @transform_4, window_bounds = array<i64: 8, 1>}, {transform_indices = @transform_5, window_bounds = array<i64: 8, 256>}, {transform_indices = @transform_6, window_bounds = array<i64: 2, 6, 256>}, {transform_indices = @transform_7, window_bounds = array<i64: 8, 1>}]} {
    %c0_i32 = arith.constant 0 : i32
    %0 = arith.cmpi eq, %arg1, %c0_i32 : i32
    %1 = arith.extui %0 : i1 to i32
    %c0_i32_0 = arith.constant 0 : i32
    %2 = arith.cmpi ne, %1, %c0_i32_0 : i32
    scf.if %2 {
      %cst_26 = arith.constant 0.000000e+00 : f32
      %38 = vector.broadcast %cst_26 : f32 to vector<8x1xf32>
      %c0_27 = arith.constant 0 : index
      %c0_28 = arith.constant 0 : index
      %39 = vector.load %arg10[%c0_27, %c0_28] : memref<8x1xf32, #tpu.memory_space<vmem>>, vector<8x1xf32>
      tpu.vector_store %arg10[%c0_27, %c0_28], %38 {strides = array<i32>} : memref<8x1xf32, #tpu.memory_space<vmem>>, vector<8x1xf32>,
      %cst_29 = arith.constant 0.000000e+00 : f32
      %40 = vector.broadcast %cst_29 : f32 to vector<8x1xf32>
      %c0_30 = arith.constant 0 : index
      %c0_31 = arith.constant 0 : index
      %41 = vector.load %arg11[%c0_30, %c0_31] : memref<8x1xf32, #tpu.memory_space<vmem>>, vector<8x1xf32>
      tpu.vector_store %arg11[%c0_30, %c0_31], %40 {strides = array<i32>} : memref<8x1xf32, #tpu.memory_space<vmem>>, vector<8x1xf32>,
    } else {
    }
    %c0 = arith.constant 0 : index
    %c0_1 = arith.constant 0 : index
    %3 = vector.load %arg7[%c0, %c0_1] : memref<8x256xf32, #tpu.memory_space<vmem>>, vector<8x256xf32>
    %c0_2 = arith.constant 0 : index
    %c0_3 = arith.constant 0 : index
    %c0_4 = arith.constant 0 : index
    %4 = vector.load %arg8[%c0_2, %c0_3, %c0_4] : memref<2x6x256xf32, #tpu.memory_space<vmem>>, vector<2x6x256xf32>
    %c0_5 = arith.constant 0 : index
    %5 = memref.load %arg2[%c0_5] : memref<1xf32, #tpu.memory_space<smem>>
    %c0_6 = arith.constant 0 : index
    %c0_7 = arith.constant 0 : index
    %c0_8 = arith.constant 0 : index
    %6 = vector.load %arg3[%c0_6, %c0_7, %c0_8] : memref<1x6x1xf32, #tpu.memory_space<vmem>>, vector<1x6x1xf32>
    %7 = vector.broadcast %6 : vector<1x6x1xf32> to vector<2x6x256xf32>
    %8 = arith.mulf %4, %7 : vector<2x6x256xf32>
    %cst = arith.constant dense<0.000000e+00> : vector<2x256xf32>
    %9 = vector.multi_reduction <add>, %8, %cst [1] : vector<2x6x256xf32> to vector<2x256xf32>
    %c0_9 = arith.constant 0 : index
    %c0_10 = arith.constant 0 : index
    %10 = vector.load %arg4[%c0_9, %c0_10] : memref<8x2xf32, #tpu.memory_space<vmem>>, vector<8x2xf32>
    %cst_11 = arith.constant dense<0.000000e+00> : vector<8x256xf32>
    %11 = tpu.matmul %10, %9, %cst_11 {dimension_numbers = #tpu.dot_dimension_numbers<[1], [0], [0], [1], [0, 0, 1, 1], [], []>} : vector<8x2xf32>, vector<2x256xf32>, vector<8x256xf32> -> vector<8x256xf32>
    %12 = vector.broadcast %5 : f32 to vector<8x256xf32>
    %13 = arith.addf %11, %12 : vector<8x256xf32>
    %14 = tpu.iota {dimensions = array<i32: 1>} : vector<1x256xi32>
    %c256_i32 = arith.constant 256 : i32
    %15 = arith.muli %arg1, %c256_i32 : i32
    %16 = vector.broadcast %15 : i32 to vector<1x256xi32>
    %17 = arith.addi %14, %16 : vector<1x256xi32>
    %c256_i32_12 = arith.constant 256 : i32
    %18 = vector.broadcast %c256_i32_12 : i32 to vector<1x256xi32>
    %19 = arith.cmpi slt, %17, %18 : vector<1x256xi32>
    %cst_13 = arith.constant 0.000000e+00 : f32
    %20 = vector.shape_cast %19 : vector<1x256xi1> to vector<1x256xi1>
    %21 = vector.broadcast %20 : vector<1x256xi1> to vector<8x256xi1>
    %22 = vector.broadcast %cst_13 : f32 to vector<8x256xf32>
    %23 = arith.select %21, %13, %22 : vector<8x256xi1>, vector<8x256xf32>
    %c0_14 = arith.constant 0 : index
    %c0_15 = arith.constant 0 : index
    %24 = vector.load %arg10[%c0_14, %c0_15] : memref<8x1xf32, #tpu.memory_space<vmem>>, vector<8x1xf32>
    %25 = arith.mulf %3, %23 : vector<8x256xf32>
    %cst_16 = arith.constant dense<0.000000e+00> : vector<8xf32>
    %26 = vector.multi_reduction <add>, %25, %cst_16 [1] : vector<8x256xf32> to vector<8xf32>
    %27 = vector.shape_cast %26 : vector<8xf32> to vector<8x1xf32>
    %28 = arith.addf %24, %27 : vector<8x1xf32>
    %c0_17 = arith.constant 0 : index
    %c0_18 = arith.constant 0 : index
    %29 = vector.load %arg10[%c0_17, %c0_18] : memref<8x1xf32, #tpu.memory_space<vmem>>, vector<8x1xf32>
    tpu.vector_store %arg10[%c0_17, %c0_18], %28 {strides = array<i32>} : memref<8x1xf32, #tpu.memory_space<vmem>>, vector<8x1xf32>,
    %c0_19 = arith.constant 0 : index
    %c0_20 = arith.constant 0 : index
    %30 = vector.load %arg11[%c0_19, %c0_20] : memref<8x1xf32, #tpu.memory_space<vmem>>, vector<8x1xf32>
    %cst_21 = arith.constant dense<0.000000e+00> : vector<8xf32>
    %31 = vector.multi_reduction <add>, %23, %cst_21 [1] : vector<8x256xf32> to vector<8xf32>
    %32 = vector.shape_cast %31 : vector<8xf32> to vector<8x1xf32>
    %33 = arith.addf %30, %32 : vector<8x1xf32>
    %c0_22 = arith.constant 0 : index
    %c0_23 = arith.constant 0 : index
    %34 = vector.load %arg11[%c0_22, %c0_23] : memref<8x1xf32, #tpu.memory_space<vmem>>, vector<8x1xf32>
    tpu.vector_store %arg11[%c0_22, %c0_23], %33 {strides = array<i32>} : memref<8x1xf32, #tpu.memory_space<vmem>>, vector<8x1xf32>,
    %c0_i32_24 = arith.constant 0 : i32
    %35 = arith.cmpi eq, %arg1, %c0_i32_24 : i32
    %36 = arith.extui %35 : i1 to i32
    %c0_i32_25 = arith.constant 0 : i32
    %37 = arith.cmpi ne, %36, %c0_i32_25 : i32
    scf.if %37 {
      %c0_26 = arith.constant 0 : index
      %c0_27 = arith.constant 0 : index
      %38 = vector.load %arg5[%c0_26, %c0_27] : memref<8x8xf32, #tpu.memory_space<vmem>>, vector<8x8xf32>
      %c0_28 = arith.constant 0 : index
      %c0_29 = arith.constant 0 : index
      %39 = vector.load %arg10[%c0_28, %c0_29] : memref<8x1xf32, #tpu.memory_space<vmem>>, vector<8x1xf32>
      %cst_30 = arith.constant dense<0.000000e+00> : vector<8x1xf32>
      %40 = tpu.matmul %38, %39, %cst_30 {dimension_numbers = #tpu.dot_dimension_numbers<[1], [0], [0], [1], [0, 0, 1, 1], [], []>} : vector<8x8xf32>, vector<8x1xf32>, vector<8x1xf32> -> vector<8x1xf32>
      %c0_31 = arith.constant 0 : index
      %c0_32 = arith.constant 0 : index
      %41 = vector.load %arg6[%c0_31, %c0_32] : memref<8x1xf32, #tpu.memory_space<vmem>>, vector<8x1xf32>
      %c0_33 = arith.constant 0 : index
      %c0_34 = arith.constant 0 : index
      %42 = vector.load %arg11[%c0_33, %c0_34] : memref<8x1xf32, #tpu.memory_space<vmem>>, vector<8x1xf32>
      %43 = arith.mulf %41, %42 : vector<8x1xf32>
      %44 = arith.addf %40, %43 : vector<8x1xf32>
      %c0_35 = arith.constant 0 : index
      %c0_36 = arith.constant 0 : index
      %45 = vector.load %arg9[%c0_35, %c0_36] : memref<8x1xf32, #tpu.memory_space<vmem>>, vector<8x1xf32>
      tpu.vector_store %arg9[%c0_35, %c0_36], %44 {strides = array<i32>} : memref<8x1xf32, #tpu.memory_space<vmem>>, vector<8x1xf32>,
    } else {
    }
    return
  }
  func.func @transform_0(%arg0: i32, %arg1: i32) -> i32 {
    %c0_i32 = arith.constant 0 : i32
    %c0_i32_0 = arith.constant 0 : i32
    return %c0_i32 : i32
  }
  func.func @transform_1(%arg0: i32, %arg1: i32) -> (i32, i32, i32) {
    %c0_i32 = arith.constant 0 : i32
    %c0_i32_0 = arith.constant 0 : i32
    %c0_i32_1 = arith.constant 0 : i32
    %c0_i32_2 = arith.constant 0 : i32
    return %c0_i32, %c0_i32_0, %c0_i32_1 : i32, i32, i32
  }
  func.func @transform_2(%arg0: i32, %arg1: i32) -> (i32, i32) {
    %c0_i32 = arith.constant 0 : i32
    %c0_i32_0 = arith.constant 0 : i32
    %c0_i32_1 = arith.constant 0 : i32
    return %c0_i32, %c0_i32_0 : i32, i32
  }
  func.func @transform_3(%arg0: i32, %arg1: i32) -> (i32, i32) {
    %c0_i32 = arith.constant 0 : i32
    %c0_i32_0 = arith.constant 0 : i32
    %c0_i32_1 = arith.constant 0 : i32
    return %c0_i32, %c0_i32_0 : i32, i32
  }
  func.func @transform_4(%arg0: i32, %arg1: i32) -> (i32, i32) {
    %c0_i32 = arith.constant 0 : i32
    %c0_i32_0 = arith.constant 0 : i32
    %c0_i32_1 = arith.constant 0 : i32
    return %c0_i32, %c0_i32_0 : i32, i32
  }
  func.func @transform_5(%arg0: i32, %arg1: i32) -> (i32, i32) {
    %c0_i32 = arith.constant 0 : i32
    return %arg0, %arg1 : i32, i32
  }
  func.func @transform_6(%arg0: i32, %arg1: i32) -> (i32, i32, i32) {
    %c0_i32 = arith.constant 0 : i32
    %c0_i32_0 = arith.constant 0 : i32
    return %arg0, %c0_i32, %arg1 : i32, i32, i32
  }
  func.func @transform_7(%arg0: i32, %arg1: i32) -> (i32, i32) {
    %c0_i32 = arith.constant 0 : i32
    %c0_i32_0 = arith.constant 0 : i32
    return %arg0, %c0_i32 : i32, i32
  }
}

</mosaic_0001>

<bundles_post_ra>
// kernel: tpu_custom_call.1
= control target key start
LH: loop header
LB: loop body
LE: loop exit
PB: predicated region body
PF: predicated region fallthrough
CT: control target
= control target key end

     0   :  { %v213_v0 = vmov 0   ;;  %vm51_vm0 = vcmask 1045504   ;;  %vm86_vm1 = vcmask 1041409   ;;  %vm93_vm2 = vcmask 1041408   ;;  %s296_s1 = inlined_call_operand.vmem [shape: f32[1,6,1], index: 1, kind: input, shape index: {}]   ;;  %s297_s6 = inlined_call_operand.vmem [shape: f32[2,6,256], index: 6, kind: input, shape index: {}]   ;;  %s298_s2 = inlined_call_operand.vmem [shape: f32[8,2], index: 2, kind: input, shape index: {}]   ;;  %s299_s0 = inlined_call_operand.<no memory space> [shape: f32[1], index: 0, kind: input, shape index: {}]   ;;  %s300_s5 = inlined_call_operand.vmem [shape: f32[8,256], index: 5, kind: input, shape index: {}]   ;;  %s301_s3 = inlined_call_operand.vmem [shape: f32[8,8], index: 3, kind: input, shape index: {}]   ;;  %s302_s4 = inlined_call_operand.vmem [shape: f32[8,1], index: 4, kind: input, shape index: {}]   ;;  %s303_s7 = inlined_call_operand.vmem [shape: f32[8,1], index: 7, kind: output, shape index: {}]  }
   0x1   :  { %212 = vset.pattern.permute.xlu0 %v213_v0  ;;  %v41_v1 = vld [vmem:[%s296_s1] sm:$0x3f]  ;;  %v37_v3 = vld [vmem:[%s297_s6 + $0x8] sm:$0x3f]  ;;  %v38_v4 = vld [vmem:[%s297_s6 + $0x10] sm:$0x3f]  ;;  %v81_v43 = vstv %s299_s0 }
   0x2   :  { %44 = vperm.xlu0 %212, %v41_v1   ;;  %v36_v2 = vld [vmem:[%s297_s6] sm:$0x3f]  ;;  %v39_v5 = vld [vmem:[%s297_s6 + $0x18] sm:$0x3f]  ;;  %vm89_vm3 = vcmask 15360   ;;  %vm31_vm4 = vcmask 7168  }
   0x3   :  { %v80_v39 = vld [vmem:[%s298_s2] sm:$0xff]  ;;  %v214_v42 = vmov 0.0   ;;  %v35_v46 = vld [vmem:[%s300_s5 + $0x8] sm:$0xff]  ;;  %vm176_vm5 = vcmask 64512  }
   0x4   :  { %33 = vst.msk [vmem:[#allocation3] sm:$0xff] %vm31_vm4, %v214_v42  ;;  %v34_v44 = vld [vmem:[%s300_s5] sm:$0xff] }
   0x5   :  { %32 = vst.msk [vmem:[#allocation2] sm:$0xff] %vm31_vm4, %v214_v42  ;;  %v171_v60 = vld [vmem:[%s301_s3] sm:$0xff] }
   0x6   :  { %v173_v62 = vld [vmem:[%s302_s4] sm:$0xff] }
   0xb   :  { %v162_v54 = vld [vmem:[#allocation3] sm:$0xff] }
   0xc   :  { %v153_v56 = vld [vmem:[#allocation2] sm:$0xff] }
  0x74   :  { %v45_v6 = vpop.permute.xlu0 %44 }
  0x75   :  { %v47_v7 = vmul.f32 %v45_v6, %v36_v2  ;;  %v48_v8 = vmul.f32 %v45_v6, %v37_v3  ;;  %v49_v9 = vmul.f32 %v45_v6, %v38_v4  ;;  %v50_v10 = vmul.f32 %v45_v6, %v39_v5 }
  0x77   :  { %v52_v11 = vsel %vm51_vm0, %v47_v7, 0.0  ;;  %v59_v12 = vsel %vm51_vm0, %v48_v8, 0.0  ;;  %v66_v13 = vsel %vm51_vm0, %v49_v9, 0.0  ;;  %v73_v14 = vsel %vm51_vm0, %v50_v10, 0.0 }
  0x78   :  { %v53_v15 = vrot.slane %v52_v11, 4  ;;  %v60_v16 = vrot.slane %v59_v12, 4  ;;  %v67_v17 = vrot.slane %v66_v13, 4  ;;  %v74_v18 = vrot.slane %v73_v14, 4 }
  0x7a   :  { %v54_v19 = vadd.f32 %v53_v15, %v52_v11  ;;  %v61_v20 = vadd.f32 %v60_v16, %v59_v12  ;;  %v68_v21 = vadd.f32 %v67_v17, %v66_v13  ;;  %v75_v22 = vadd.f32 %v74_v18, %v73_v14 }
  0x7c   :  { %v55_v23 = vrot.slane %v54_v19, 2  ;;  %v69_v24 = vrot.slane %v68_v21, 2  ;;  %v62_v25 = vrot.slane %v61_v20, 2  ;;  %v76_v26 = vrot.slane %v75_v22, 2 }
  0x7e   :  { %v56_v27 = vadd.f32 %v55_v23, %v54_v19  ;;  %v70_v28 = vadd.f32 %v69_v24, %v68_v21  ;;  %v63_v29 = vadd.f32 %v62_v25, %v61_v20  ;;  %v77_v30 = vadd.f32 %v76_v26, %v75_v22 }
  0x80   :  { %v57_v31 = vrot.slane %v56_v27, 1  ;;  %v71_v32 = vrot.slane %v70_v28, 1  ;;  %v64_v33 = vrot.slane %v63_v29, 1  ;;  %v78_v34 = vrot.slane %v77_v30, 1 }
  0x82   :  { %v58_v35 = vadd.f32 %v57_v31, %v56_v27  ;;  %v72_v36 = vadd.f32 %v71_v32, %v70_v28  ;;  %v65_v37 = vadd.f32 %v64_v33, %v63_v29  ;;  %v79_v38 = vadd.f32 %v78_v34, %v77_v30 }
  0x84   :  { %v87_v40 = vsel %vm86_vm1, %v72_v36, %v58_v35  ;;  %v88_v41 = vsel %vm86_vm1, %v79_v38, %v65_v37 }
  0x85   :  { %205 = vmatpush.msk.msra.mxu0 %vm93_vm2, %v87_v40  ;;  %207 = vmatpush.msk.msra.mxu1 %vm93_vm2, %v88_v41 }
  0x86   :  { %206 = vmatmul.msk.f32.vlgmr.msra.gmra.mxu0 %vm89_vm3, %v80_v39  ;;  %208 = vmatmul.msk.f32.vlgmr.msra.gmra.mxu1 %vm89_vm3, %v80_v39 }
 0x103   :  { %v115_v45 = vpop.f32.mrf.mxu0  ;;  %v135_v47 = vpop.f32.mrf.mxu1 }
 0x104   :  { %v116_v48 = vadd.f32 %v115_v45, %v81_v43  ;;  %v136_v49 = vadd.f32 %v135_v47, %v81_v43 }
 0x106   :  { %v154_v50 = vmul.f32 %v116_v48, %v34_v44  ;;  %v155_v51 = vmul.f32 %v136_v49, %v35_v46  ;;  %v163_v52 = vadd.f32 %v136_v49, %v116_v48 }
 0x108   :  { %164 = vadd.xlane.f32.xlu1 %v163_v52  ;;  %v156_v53 = vadd.f32 %v155_v51, %v154_v50 }
 0x10a   :  { %157 = vadd.xlane.f32.xlu0 %v156_v53 }
 0x17b   :  { %v165_v55 = vpop.xlane.xlu1 %164 }
 0x17c   :  { %v166_v57 = vadd.f32 %v165_v55, %v162_v54 }
 0x17d   :  { %v158_v58 = vpop.xlane.xlu0 %157 }
 0x17e   :  { %167 = vst.msk [vmem:[#allocation3] sm:$0xff] %vm31_vm4, %v166_v57  ;;  %v159_v59 = vadd.f32 %v158_v58, %v153_v56 }
 0x180   :  { %161 = vst.msk [vmem:[#allocation2] sm:$0xff] %vm31_vm4, %v159_v59 }
 0x185   :  { %v174_v63 = vld [vmem:[#allocation3] sm:$0xff] }
 0x186   :  { %v175_v0 = vmul.f32 %v174_v63, %v173_v62 }
 0x187   :  { %v172_v61 = vld [vmem:[#allocation2] sm:$0xff] }
 0x188   :  { %195 = vmatpush.msra.mxu2 %v172_v61 }
 0x189   :  { %209 = vmatmul.msk.f32.vlgmr.msra.gmra.mxu2 %vm176_vm5, %v171_v60 }
 0x20c   :  { %v197_v1 = vpop.f32.mrf.mxu2 }
 0x20d   :  { %v198_v2 = vadd.f32 %v197_v1, %v175_v0 }
 0x20f   :  { %200 = vst.msk [vmem:[%s303_s7] sm:$0xff] %vm31_vm4, %v198_v2 }

</bundles_post_ra>
